<compile_context>
chip_gen: v6e
topology: v6e:2x2x1
jax: 0.10.0
libtpu: 0.0.40
codegen_flags: <defaults>
</compile_context>

<pallas_src>
from functools import lru_cache

import numpy as np
import jax
import jax.numpy as jnp
from jax.experimental import pallas as pl
from jax.experimental.pallas import tpu as pltpu


# ---------------------------------------------------------------------------
# Fused Pallas kernel: query-weighted mask sum + bilinear upsample
# ---------------------------------------------------------------------------
def _make_kernel(batch, cpad):
    def kernel(pf_ref, weff_ref, rt_ref, o_ref, seg_scr):
        """Single-invocation fused post-backbone math.

        pf_ref   : (B, D, hw)        pixel-decoder features (flat low-res spatial)
        weff_ref : (C_pad, D)        hoisted head:  W_eff = cls_fg^T @ q  (zero-padded)
        rt_ref   : (hw, HW)          transposed kron(Rh, Rw) bilinear resize matrix
        o_ref    : (B*C_pad, HW)     upsampled logits, lane-dense flat output
        seg_scr  : (B*C_pad, hw)     VMEM scratch holding per-batch seg slabs
        """
        w_eff = weff_ref[...]                                       # (C_pad, D)
        for b in range(batch):                                      # static unroll (B small)
            seg_scr[b * cpad:(b + 1) * cpad, :] = jnp.dot(
                w_eff, pf_ref[b], preferred_element_type=jnp.float32)   # (C_pad, hw)
        # One lane-dense resize matmul for all batches / classes at once.
        o_ref[...] = jnp.dot(seg_scr[...], rt_ref[...],
                             preferred_element_type=jnp.float32)    # (B*C_pad, HW)
    return kernel


def mask2former_fused(pixel_feats, w_eff_pad, r_t):
    """pixel_feats: (B, D, hw); w_eff_pad: (C_pad, D); r_t: (hw, HW).
    Returns (B*C_pad, HW) upsampled flat logits."""
    B, D, hw = pixel_feats.shape
    Cp = w_eff_pad.shape[0]
    HW = r_t.shape[1]
    kernel = _make_kernel(B, Cp)
    return pl.pallas_call(
        kernel,
        out_shape=jax.ShapeDtypeStruct((B * Cp, HW), jnp.float32),
        grid=(1,),
        in_specs=[
            pl.BlockSpec((B, D, hw), lambda i: (0, 0, 0)),
            pl.BlockSpec((Cp, D), lambda i: (0, 0)),
            pl.BlockSpec((hw, HW), lambda i: (0, 0)),
        ],
        out_specs=pl.BlockSpec((B * Cp, HW), lambda i: (0, 0)),
        scratch_shapes=[pltpu.VMEM((B * Cp, hw), jnp.float32)],
        compiler_params=pltpu.CompilerParams(
            dimension_semantics=("arbitrary",)),
    )(pixel_feats, w_eff_pad, r_t)


# ---------------------------------------------------------------------------
# Glue (plain JAX / numpy)
# ---------------------------------------------------------------------------
def bilinear_matrix(out_size, in_size):
    """Row-interpolation matrix matching F.interpolate(mode='bilinear',
    align_corners=False). numpy float32 (out_size, in_size)."""
    d = np.arange(out_size, dtype=np.float64)
    scale = in_size / out_size
    src = (d + 0.5) * scale - 0.5
    src = np.clip(src, 0.0, None)
    i0 = np.minimum(np.floor(src).astype(np.int64), in_size - 1)
    i1 = np.minimum(i0 + 1, in_size - 1)
    frac = src - i0
    R = np.zeros((out_size, in_size), dtype=np.float32)
    rows = np.arange(out_size)
    R[rows, i0] += (1.0 - frac).astype(np.float32)
    R[rows, i1] += frac.astype(np.float32)
    return R


@lru_cache(maxsize=None)
def _resize_matrix_t(out_h, out_w, in_h, in_w):
    """Cached: built & transferred once per (H, W, h, w) instead of per call."""
    Rh = bilinear_matrix(out_h, in_h)
    Rw = bilinear_matrix(out_w, in_w)
    return jnp.asarray(np.kron(Rh, Rw).T)          # (h*w, H*W)


def make_params(key, in_ch=3, hidden=32, num_queries=8, classes=7):
    k1, k2, k3, k4, k5 = jax.random.split(key, 5)
    cp1 = classes + 1
    return {
        "w_proj": 0.1 * jax.random.normal(k1, (in_ch, hidden), jnp.float32),
        "b_proj": 0.1 * jax.random.normal(k2, (hidden,), jnp.float32),
        "query_emb": 0.1 * jax.random.normal(k3, (num_queries, hidden), jnp.float32),
        "w_cls": 0.1 * jax.random.normal(k4, (hidden, cp1), jnp.float32),
        "b_cls": 0.1 * jax.random.normal(k5, (1, cp1), jnp.float32),
    }


def pixel_features(image, params, stride=4):
    """Synthetic pixel decoder: stride-4 average pool + 1x1 conv projection."""
    B, Cin, H, W = image.shape
    h, w = H // stride, W // stride
    pooled = image.reshape(B, Cin, h, stride, w, stride).mean(axis=(3, 5))  # (B,Cin,h,w)
    pf = jnp.einsum("bchw,cd->bdhw", pooled, params["w_proj"]) \
        + params["b_proj"][None, :, None, None]
    return pf.reshape(B, -1, h * w), h, w


def mask2former_forward(image, params):
    """Mirrors Mask2Former.forward: model head -> query-weighted mask sum ->
    drop channel 0 -> bilinear upsample to image resolution (fused kernel)."""
    B, _, H, W = image.shape
    pf, h, w = pixel_features(image, params)
    q = params["query_emb"]                                        # (Q, D)
    # Hoisted batch-invariant class head (background channel dropped):
    cls_fg = q @ params["w_cls"][:, 1:] + params["b_cls"][:, 1:]   # (Q, C)
    w_eff = cls_fg.T @ q                                           # (C, D)
    C = w_eff.shape[0]
    Cp = ((C + 7) // 8) * 8                                        # pad classes to 8-sublane
    w_eff_pad = jnp.pad(w_eff, ((0, Cp - C), (0, 0)))
    r_t = _resize_matrix_t(H, W, h, w)                             # (hw, HW), cached
    up_flat = mask2former_fused(pf, w_eff_pad, r_t)                # (B*Cp, HW)
    return up_flat.reshape(B, Cp, H, W)[:, :C]


def reference_forward(image, params):
    """Pure-JAX reference for numerical verification of the fused kernel."""
    B, _, H, W = image.shape
    pf, h, w = pixel_features(image, params)
    q = params["query_emb"]
    masks = jnp.einsum("qd,bdp->bqp", q, pf)                     # (B,Q,hw)
    cls = q @ params["w_cls"] + params["b_cls"]                  # (Q,Cp1)
    cls = jnp.broadcast_to(cls[None], (B,) + cls.shape)          # (B,Q,Cp1)
    seg = jnp.einsum("bqp,bqc->bcp", masks, cls)[:, 1:, :]       # (B,C,hw)
    C = seg.shape[1]
    seg = seg.reshape(B, C, h, w)
    Rh = jnp.asarray(bilinear_matrix(H, h))
    Rw = jnp.asarray(bilinear_matrix(W, w))
    up = jnp.einsum("Hh,bchw,Ww->bcHW", Rh, seg, Rw)
    return up


if __name__ == "__main__":
    key = jax.random.PRNGKey(0)
    k_img, k_par = jax.random.split(key)

    B, Cin, H, W = 2, 3, 32, 32
    image = jax.random.normal(k_img, (B, Cin, H, W), jnp.float32)
    params = make_params(k_par, in_ch=Cin, hidden=32, num_queries=8, classes=7)

    out = mask2former_forward(image, params)
    out = jax.block_until_ready(out)

    ref = jax.block_until_ready(reference_forward(image, params))
    assert out.shape == (B, 7, H, W), out.shape
    np.testing.assert_allclose(np.asarray(out), np.asarray(ref), rtol=1e-4, atol=1e-4)

    print("KERNEL_OK")
</pallas_src>

<mosaic_0001>
module attributes {stable_mosaic.version = 11 : i64} {
  func.func @kernel(%arg0: i32, %arg1: memref<2x32x64xf32, #tpu.memory_space<vmem>>, %arg2: memref<8x32xf32, #tpu.memory_space<vmem>>, %arg3: memref<64x1024xf32, #tpu.memory_space<vmem>>, %arg4: memref<16x1024xf32, #tpu.memory_space<vmem>>, %arg5: memref<16x64xf32, #tpu.memory_space<vmem>>) attributes {dimension_semantics = [#tpu.dimension_semantics<arbitrary>], iteration_bounds = array<i64: 1>, scalar_prefetch = 0 : i64, scratch_operands = 1 : i64, tpu.core_type = #tpu.core_type<tc>, window_params = [{pipeline_mode = #tpu.pipeline_mode<synchronous>, transform_indices = @transform_0, window_bounds = array<i64: 2, 32, 64>}, {pipeline_mode = #tpu.pipeline_mode<synchronous>, transform_indices = @transform_1, window_bounds = array<i64: 8, 32>}, {pipeline_mode = #tpu.pipeline_mode<synchronous>, transform_indices = @transform_2, window_bounds = array<i64: 64, 1024>}, {pipeline_mode = #tpu.pipeline_mode<synchronous>, transform_indices = @transform_3, window_bounds = array<i64: 16, 1024>}]} {
    %c0 = arith.constant 0 : index
    %c0_0 = arith.constant 0 : index
    %0 = vector.load %arg2[%c0, %c0_0] : memref<8x32xf32, #tpu.memory_space<vmem>>, vector<8x32xf32>
    %c0_1 = arith.constant 0 : index
    %c0_2 = arith.constant 0 : index
    %c0_3 = arith.constant 0 : index
    %1 = vector.load %arg1[%c0_1, %c0_2, %c0_3] : memref<2x32x64xf32, #tpu.memory_space<vmem>>, vector<1x32x64xf32>
    %2 = vector.shape_cast %1 : vector<1x32x64xf32> to vector<32x64xf32>
    %cst = arith.constant dense<0.000000e+00> : vector<8x64xf32>
    %3 = tpu.matmul %0, %2, %cst {dimension_numbers = #tpu.dot_dimension_numbers<[1], [0], [0], [1], [0, 0, 1, 1], [], []>} : vector<8x32xf32>, vector<32x64xf32>, vector<8x64xf32> -> vector<8x64xf32>
    %c0_4 = arith.constant 0 : index
    %c0_5 = arith.constant 0 : index
    %4 = vector.load %arg5[%c0_4, %c0_5] : memref<16x64xf32, #tpu.memory_space<vmem>>, vector<8x64xf32>
    tpu.vector_store %arg5[%c0_4, %c0_5], %3 {strides = array<i32>} : memref<16x64xf32, #tpu.memory_space<vmem>>, vector<8x64xf32>,
    %c1 = arith.constant 1 : index
    %c0_6 = arith.constant 0 : index
    %c0_7 = arith.constant 0 : index
    %5 = vector.load %arg1[%c1, %c0_6, %c0_7] : memref<2x32x64xf32, #tpu.memory_space<vmem>>, vector<1x32x64xf32>
    %6 = vector.shape_cast %5 : vector<1x32x64xf32> to vector<32x64xf32>
    %cst_8 = arith.constant dense<0.000000e+00> : vector<8x64xf32>
    %7 = tpu.matmul %0, %6, %cst_8 {dimension_numbers = #tpu.dot_dimension_numbers<[1], [0], [0], [1], [0, 0, 1, 1], [], []>} : vector<8x32xf32>, vector<32x64xf32>, vector<8x64xf32> -> vector<8x64xf32>
    %c8 = arith.constant 8 : index
    %c0_9 = arith.constant 0 : index
    %8 = vector.load %arg5[%c8, %c0_9] : memref<16x64xf32, #tpu.memory_space<vmem>>, vector<8x64xf32>
    tpu.vector_store %arg5[%c8, %c0_9], %7 {strides = array<i32>} : memref<16x64xf32, #tpu.memory_space<vmem>>, vector<8x64xf32>,
    %c0_10 = arith.constant 0 : index
    %c0_11 = arith.constant 0 : index
    %9 = vector.load %arg5[%c0_10, %c0_11] : memref<16x64xf32, #tpu.memory_space<vmem>>, vector<16x64xf32>
    %c0_12 = arith.constant 0 : index
    %c0_13 = arith.constant 0 : index
    %10 = vector.load %arg3[%c0_12, %c0_13] : memref<64x1024xf32, #tpu.memory_space<vmem>>, vector<64x1024xf32>
    %cst_14 = arith.constant dense<0.000000e+00> : vector<16x1024xf32>
    %11 = tpu.matmul %9, %10, %cst_14 {dimension_numbers = #tpu.dot_dimension_numbers<[1], [0], [0], [1], [0, 0, 1, 1], [], []>} : vector<16x64xf32>, vector<64x1024xf32>, vector<16x1024xf32> -> vector<16x1024xf32>
    %c0_15 = arith.constant 0 : index
    %c0_16 = arith.constant 0 : index
    %12 = vector.load %arg4[%c0_15, %c0_16] : memref<16x1024xf32, #tpu.memory_space<vmem>>, vector<16x1024xf32>
    tpu.vector_store %arg4[%c0_15, %c0_16], %11 {strides = array<i32>} : memref<16x1024xf32, #tpu.memory_space<vmem>>, vector<16x1024xf32>,
    return
  }
  func.func @transform_0(%arg0: i32) -> (i32, i32, i32) {
    %c0_i32 = arith.constant 0 : i32
    %c0_i32_0 = arith.constant 0 : i32
    %c0_i32_1 = arith.constant 0 : i32
    %c0_i32_2 = arith.constant 0 : i32
    return %c0_i32, %c0_i32_0, %c0_i32_1 : i32, i32, i32
  }
  func.func @transform_1(%arg0: i32) -> (i32, i32) {
    %c0_i32 = arith.constant 0 : i32
    %c0_i32_0 = arith.constant 0 : i32
    %c0_i32_1 = arith.constant 0 : i32
    return %c0_i32, %c0_i32_0 : i32, i32
  }
  func.func @transform_2(%arg0: i32) -> (i32, i32) {
    %c0_i32 = arith.constant 0 : i32
    %c0_i32_0 = arith.constant 0 : i32
    %c0_i32_1 = arith.constant 0 : i32
    return %c0_i32, %c0_i32_0 : i32, i32
  }
  func.func @transform_3(%arg0: i32) -> (i32, i32) {
    %c0_i32 = arith.constant 0 : i32
    %c0_i32_0 = arith.constant 0 : i32
    %c0_i32_1 = arith.constant 0 : i32
    return %c0_i32, %c0_i32_0 : i32, i32
  }
}

</mosaic_0001>

<bundles_post_ra>
// kernel: tpu_custom_call.1
= control target key start
LH: loop header
LB: loop body
LE: loop exit
PB: predicated region body
PF: predicated region fallthrough
CT: control target
= control target key end

     0   :  { %8 = vsyncpa [#allocation4], 0  ;;  %s845_s0 = inlined_call_operand.hbm [shape: f32[2,32,64], index: 0, kind: input, shape index: {}]   ;;  %s846_s1 = inlined_call_operand.hbm [shape: f32[8,32], index: 1, kind: input, shape index: {}]   ;;  %s847_s2 = inlined_call_operand.hbm [shape: f32[64,1024], index: 2, kind: input, shape index: {}]   ;;  %s848_s3 = inlined_call_operand.hbm [shape: f32[16,1024], index: 3, kind: output, shape index: {}]  }
   0x1   :  { %9 = vsyncpa [#allocation7], 0 }
   0x2   :  { %10 = vsyncpa [#allocation5], 0  ;;  %s763_s12 = smov [#allocation6]   ;;  %s764_s14 = smov [#allocation3]  }
   0x3   :  { %s29_s13 = sshll.u32 %s763_s12, 4  ;;  %s16_s15 = sshll.u32 %s764_s14, 4  ;;  %s30_s13 = int_to_ptr.vmem [resolvable:$true] %s29_s13  ;;  %s17_s15 = int_to_ptr.vmem [resolvable:$true] %s16_s15 }
   0x4   :  { %s685_s16 = scalar_lea.vmem %s30_s13, 128  ;;  %p690_p1 = scmp.lt.s32.totalorder %s30_s13, %s30_s13 }
   0x5   :  { %p686_p0 = scmp.ne.s32.totalorder %s30_s13, %s685_s16  ;;  %p691_p2 = scmp.lt.s32.totalorder %s685_s16, %s685_s16 }
   0x7   :  { %p692_p3 = por %p691_p2, %p690_p1 }
   0x9   :  { %p693_p4 = pnand %p692_p3, %p686_p0 }
   0xb   :  { %696 = shalt.err (!%p693_p4)
}
   0xc   :  { %32 = dma.hbm_to_vmem [thread:$0]  %s846_s1, 128, %s30_s13, [#allocation7]  }
   0xd   :  { %s705_s19 = scalar_lea.vmem %s17_s15, 1024  ;;  %p710_p6 = scmp.lt.s32.totalorder %s17_s15, %s17_s15 }
   0xe   :  { %p706_p5 = scmp.ne.s32.totalorder %s17_s15, %s705_s19  ;;  %p711_p7 = scmp.lt.s32.totalorder %s705_s19, %s705_s19 }
  0x10   :  { %p712_p8 = por %p711_p7, %p710_p6 }
  0x12   :  { %p713_p9 = pnand %p712_p8, %p706_p5 }
  0x14   :  { %716 = shalt.err (!%p713_p9)
}
  0x15   :  { %s765_s20 = smov 128   ;;  %s766_s21 = smov 8  }
  0x16   :  { %22 = dma.hbm_to_vmem [thread:$0]  %s845_s0, 1024, %s17_s15, [#allocation4], %s765_s20, %s765_s20, %s766_s21  }
  0x17   :  { %s767_s24 = smov [#allocation8]  }
  0x18   :  { %s38_s25 = sshll.u32 %s767_s24, 4  ;;  %s39_s25 = int_to_ptr.vmem [resolvable:$true] %s38_s25 }
  0x19   :  { %s725_s26 = scalar_lea.vmem %s39_s25, 8192  ;;  %p730_p11 = scmp.lt.s32.totalorder %s39_s25, %s39_s25 }
  0x1a   :  { %p726_p10 = scmp.ne.s32.totalorder %s39_s25, %s725_s26  ;;  %p731_p12 = scmp.lt.s32.totalorder %s725_s26, %s725_s26 }
  0x1c   :  { %p732_p13 = por %p731_p12, %p730_p11 }
  0x1e   :  { %p733_p0 = pnand %p732_p13, %p726_p10 }
  0x20   :  { %736 = shalt.err (!%p733_p0)
}
  0x21   :  { %s768_s1 = smov 1024   ;;  %s769_s27 = smov 64  }
  0x22   :  { %44 = dma.hbm_to_vmem [thread:$0]  %s847_s2, 8192, %s39_s25, [#allocation7], %s768_s1, %s768_s1, %s769_s27  }
  0x23   :  { %757 = dma.done.wait [#allocation4], 1024  }
  0x24   :  { %758 = vsyncadd [#allocation4], 4294966272 }
  0x25   :  { %759 = dma.done.wait [#allocation7], 8320  }
  0x26   :  { %760 = vsyncadd [#allocation7], 4294958976  ;;  %v770_v0 = vmov 0.0   ;;  %vm771_vm0 = vmmov 0   ;;  %v58_v1 = vld [vmem:[#allocation3 + $0x18] sm:$0xff]  ;;  %v57_v2 = vld [vmem:[#allocation3 + $0x10] sm:$0xff] }
  0x27   :  { %645 = vmatprep.subr.mxu0 %v770_v0  ;;  %653 = vmatprep.mubr.msk.f32.mxu0 %vm771_vm0, %v770_v0  ;;  %v139_v3 = vld [vmem:[#allocation3 + $0x38] sm:$0xff]  ;;  %v56_v4 = vld [vmem:[#allocation3 + $0x8] sm:$0xff]  ;;  %v138_v5 = vld [vmem:[#allocation3 + $0x30] sm:$0xff]  ;;  %vm59_vm1 = vcmask 261120   ;;  %vm133_vm2 = vcmask 523264   ;;  %s772_s0 = smov [#allocation9]  }
  0x28   :  { %656 = vmatprep.subr.mxu1 %v770_v0  ;;  %664 = vmatprep.mubr.msk.f32.mxu1 %vm771_vm0, %v770_v0  ;;  %v137_v6 = vld [vmem:[#allocation3 + $0x28] sm:$0xff]  ;;  %v55_v7 = vld [vmem:[#allocation3] sm:$0xff]  ;;  %v270_v10 = vld [vmem:[#allocation8 + $0x1c8] sm:$0xff]  ;;  %s612_s2 = sshll.u32 %s772_s0, 4  ;;  %s613_s2 = int_to_ptr.vmem [resolvable:$true] %s612_s2 }
  0x29   :  { %646 = vmatpush3.msra.mxu0 %v58_v1  ;;  %657 = vmatpush3.msra.mxu1 %v139_v3  ;;  %v54_v8 = vld [vmem:[#allocation6] sm:$0xff]  ;;  %v269_v12 = vld [vmem:[#allocation8 + $0x1c0] sm:$0xff]  ;;  %v271_v13 = vld [vmem:[#allocation8 + $0x1d0] sm:$0xff]  ;;  %s737_s30 = scalar_lea.vmem %s613_s2, 2048  ;;  %p742_p2 = scmp.lt.s32.totalorder %s613_s2, %s613_s2 }
  0x2a   :  { %647 = vmatprep.subr.mxu0 %v770_v0  ;;  %658 = vmatprep.subr.mxu1 %v770_v0  ;;  %v136_v9 = vld [vmem:[#allocation3 + $0x20] sm:$0xff]  ;;  %v262_v14 = vld [vmem:[#allocation8 + $0x188] sm:$0xff]  ;;  %v261_v16 = vld [vmem:[#allocation8 + $0x180] sm:$0xff]  ;;  %p738_p1 = scmp.ne.s32.totalorder %s613_s2, %s737_s30  ;;  %p743_p3 = scmp.lt.s32.totalorder %s737_s30, %s737_s30 }
  0x2b   :  { %648 = vmatpush3.msra.mxu0 %v57_v2  ;;  %659 = vmatpush3.msra.mxu1 %v138_v5  ;;  %v272_v11 = vld [vmem:[#allocation8 + $0x1d8] sm:$0xff]  ;;  %v263_v17 = vld [vmem:[#allocation8 + $0x190] sm:$0xff]  ;;  %v254_v18 = vld [vmem:[#allocation8 + $0x148] sm:$0xff] }
  0x2c   :  { %649 = vmatprep.subr.mxu0 %v770_v0  ;;  %660 = vmatprep.subr.mxu1 %v770_v0  ;;  %v264_v15 = vld [vmem:[#allocation8 + $0x198] sm:$0xff]  ;;  %v253_v20 = vld [vmem:[#allocation8 + $0x140] sm:$0xff]  ;;  %v255_v21 = vld [vmem:[#allocation8 + $0x150] sm:$0xff]  ;;  %p744_p4 = por %p743_p3, %p742_p2 }
  0x2d   :  { %650 = vmatpush3.msra.mxu0 %v56_v4  ;;  %661 = vmatpush3.msra.mxu1 %v137_v6  ;;  %v256_v19 = vld [vmem:[#allocation8 + $0x158] sm:$0xff]  ;;  %v246_v22 = vld [vmem:[#allocation8 + $0x108] sm:$0xff]  ;;  %v245_v24 = vld [vmem:[#allocation8 + $0x100] sm:$0xff] }
  0x2e   :  { %651 = vmatprep.subr.mxu0 %v770_v0  ;;  %662 = vmatprep.subr.mxu1 %v770_v0  ;;  %v248_v23 = vld [vmem:[#allocation8 + $0x118] sm:$0xff]  ;;  %v247_v25 = vld [vmem:[#allocation8 + $0x110] sm:$0xff]  ;;  %v238_v26 = vld [vmem:[#allocation8 + $0xc8] sm:$0xff]  ;;  %p745_p5 = pnand %p744_p4, %p738_p1 }
  0x2f   :  { %652 = vmatpush3.msra.mxu0 %v55_v7  ;;  %663 = vmatpush3.msra.mxu1 %v136_v9  ;;  %v240_v27 = vld [vmem:[#allocation8 + $0xd8] sm:$0xff]  ;;  %v237_v28 = vld [vmem:[#allocation8 + $0xc0] sm:$0xff]  ;;  %v239_v29 = vld [vmem:[#allocation8 + $0xd0] sm:$0xff] }
  0x30   :  { %654 = vmatmul.mubr.msk.f32.vlgmr.msra.gmra.mxu0 %vm59_vm1, %v54_v8  ;;  %665 = vmatmul.mubr.msk.f32.vlgmr.msra.gmra.mxu1 %vm59_vm1, %v54_v8  ;;  %v230_v30 = vld [vmem:[#allocation8 + $0x88] sm:$0xff]  ;;  %v232_v31 = vld [vmem:[#allocation8 + $0x98] sm:$0xff]  ;;  %v229_v32 = vld [vmem:[#allocation8 + $0x80] sm:$0xff] }
  0x31   :  { %299 = vmatprep.subr.mxu0 %v270_v10  ;;  %376 = vmatprep.subr.mxu1 %v272_v11  ;;  %v231_v33 = vld [vmem:[#allocation8 + $0x90] sm:$0xff]  ;;  %v222_v34 = vld [vmem:[#allocation8 + $0x48] sm:$0xff]  ;;  %v224_v35 = vld [vmem:[#allocation8 + $0x58] sm:$0xff] }
  0x32   :  { %300 = vmatpush1.msra.mxu0 %v269_v12  ;;  %377 = vmatpush1.msra.mxu1 %v271_v13  ;;  %v221_v36 = vld [vmem:[#allocation8 + $0x40] sm:$0xff]  ;;  %v223_v37 = vld [vmem:[#allocation8 + $0x50] sm:$0xff]  ;;  %v214_v38 = vld [vmem:[#allocation8 + $0x8] sm:$0xff] }
  0x33   :  { %301 = vmatprep.subr.mxu0 %v262_v14  ;;  %378 = vmatprep.subr.mxu1 %v264_v15  ;;  %v216_v39 = vld [vmem:[#allocation8 + $0x18] sm:$0xff]  ;;  %v213_v40 = vld [vmem:[#allocation8] sm:$0xff]  ;;  %v215_v41 = vld [vmem:[#allocation8 + $0x10] sm:$0xff] }
  0x34   :  { %302 = vmatpush1.msra.mxu0 %v261_v16  ;;  %379 = vmatpush1.msra.mxu1 %v263_v17  ;;  %v274_v42 = vld [vmem:[#allocation8 + $0x1e8] sm:$0xff]  ;;  %v276_v43 = vld [vmem:[#allocation8 + $0x1f8] sm:$0xff]  ;;  %v273_v48 = vld [vmem:[#allocation8 + $0x1e0] sm:$0xff] }
  0x35   :  { %303 = vmatprep.subr.mxu0 %v254_v18  ;;  %380 = vmatprep.subr.mxu1 %v256_v19  ;;  %v275_v49 = vld [vmem:[#allocation8 + $0x1f0] sm:$0xff]  ;;  %v266_v51 = vld [vmem:[#allocation8 + $0x1a8] sm:$0xff]  ;;  %v268_v52 = vld [vmem:[#allocation8 + $0x1b8] sm:$0xff] }
  0x36   :  { %304 = vmatpush1.msra.mxu0 %v253_v20  ;;  %381 = vmatpush1.msra.mxu1 %v255_v21  ;;  %v265_v53 = vld [vmem:[#allocation8 + $0x1a0] sm:$0xff]  ;;  %v267_v54 = vld [vmem:[#allocation8 + $0x1b0] sm:$0xff]  ;;  %v258_v55 = vld [vmem:[#allocation8 + $0x168] sm:$0xff] }
  0x37   :  { %305 = vmatprep.subr.mxu0 %v246_v22  ;;  %382 = vmatprep.subr.mxu1 %v248_v23  ;;  %v260_v56 = vld [vmem:[#allocation8 + $0x178] sm:$0xff]  ;;  %v257_v57 = vld [vmem:[#allocation8 + $0x160] sm:$0xff]  ;;  %v259_v58 = vld [vmem:[#allocation8 + $0x170] sm:$0xff] }
  0x38   :  { %306 = vmatpush1.msra.mxu0 %v245_v24  ;;  %383 = vmatpush1.msra.mxu1 %v247_v25  ;;  %v250_v59 = vld [vmem:[#allocation8 + $0x128] sm:$0xff]  ;;  %v252_v60 = vld [vmem:[#allocation8 + $0x138] sm:$0xff]  ;;  %v249_v61 = vld [vmem:[#allocation8 + $0x120] sm:$0xff] }
  0x39   :  { %347 = vmatprep.mubr.f32.mxu0 %v770_v0  ;;  %424 = vmatprep.mubr.f32.mxu1 %v770_v0  ;;  %v251_v62 = vld [vmem:[#allocation8 + $0x130] sm:$0xff]  ;;  %v242_v63 = vld [vmem:[#allocation8 + $0xe8] sm:$0xff]  ;;  %v244_v1 = vld [vmem:[#allocation8 + $0xf8] sm:$0xff] }
  0x3a   :  { %307 = vmatprep.subr.mxu0 %v238_v26  ;;  %384 = vmatprep.subr.mxu1 %v240_v27  ;;  %v241_v2 = vld [vmem:[#allocation8 + $0xe0] sm:$0xff]  ;;  %v243_v3 = vld [vmem:[#allocation8 + $0xf0] sm:$0xff]  ;;  %v234_v5 = vld [vmem:[#allocation8 + $0xa8] sm:$0xff] }
  0x3b   :  { %308 = vmatpush1.msra.mxu0 %v237_v28  ;;  %385 = vmatpush1.msra.mxu1 %v239_v29  ;;  %v236_v6 = vld [vmem:[#allocation8 + $0xb8] sm:$0xff]  ;;  %v233_v7 = vld [vmem:[#allocation8 + $0xa0] sm:$0xff]  ;;  %v235_v8 = vld [vmem:[#allocation8 + $0xb0] sm:$0xff] }
  0x3c   :  { %309 = vmatprep.subr.mxu0 %v230_v30  ;;  %386 = vmatprep.subr.mxu1 %v232_v31  ;;  %v226_v9 = vld [vmem:[#allocation8 + $0x68] sm:$0xff]  ;;  %v228_v10 = vld [vmem:[#allocation8 + $0x78] sm:$0xff]  ;;  %v225_v11 = vld [vmem:[#allocation8 + $0x60] sm:$0xff] }
  0x3d   :  { %310 = vmatpush1.msra.mxu0 %v229_v32  ;;  %387 = vmatpush1.msra.mxu1 %v231_v33  ;;  %v227_v12 = vld [vmem:[#allocation8 + $0x70] sm:$0xff]  ;;  %v218_v13 = vld [vmem:[#allocation8 + $0x28] sm:$0xff]  ;;  %v220_v14 = vld [vmem:[#allocation8 + $0x38] sm:$0xff] }
  0x3e   :  { %311 = vmatprep.subr.mxu0 %v222_v34  ;;  %388 = vmatprep.subr.mxu1 %v224_v35  ;;  %v217_v15 = vld [vmem:[#allocation8 + $0x20] sm:$0xff]  ;;  %v219_v16 = vld [vmem:[#allocation8 + $0x30] sm:$0xff] }
  0x3f   :  { %312 = vmatpush1.msra.mxu0 %v221_v36  ;;  %389 = vmatpush1.msra.mxu1 %v223_v37 }
  0x40   :  { %313 = vmatprep.subr.mxu0 %v214_v38  ;;  %390 = vmatprep.subr.mxu1 %v216_v39 }
  0x41   :  { %314 = vmatpush1.msra.mxu0 %v213_v40  ;;  %391 = vmatpush1.msra.mxu1 %v215_v41 }
  0x42   :  { %453 = vmatprep.subr.mxu0 %v274_v42  ;;  %530 = vmatprep.subr.mxu1 %v276_v43 }
  0xf0   :  { %v129_v44 = vpop.f32.mrf.mxu0  ;;  %v206_v45 = vpop.f32.mrf.mxu1 }
  0xf1   :  { %134 = vst.msk [vmem:[#allocation2] sm:$0xff] %vm133_vm2, %v129_v44  ;;  %210 = vst.msk [vmem:[#allocation2 + $0x8] sm:$0xff] %vm133_vm2, %v206_v45 }
  0xf2   :  { %v655_v46 = vpop.f32.mrf.mxu0  ;;  %v666_v47 = vpop.f32.mrf.mxu1 }
  0xf8   :  { %v819_v50 = vld [vmem:[#allocation2] sm:$0xff]  ;;  %v212_v4 = vld [vmem:[#allocation2 + $0x8] sm:$0xff] }
  0xf9   :  { %627 = vmatmul.mubr.msk.f32.vlgmr.msra.gmra.mxu0 %vm133_vm2, %v819_v50  ;;  %629 = vmatmul.mubr.msk.f32.vlgmr.msra.gmra.mxu1 %vm133_vm2, %v819_v50 }
  0xfa   :  { %454 = vmatpush1.msra.mxu0 %v273_v48  ;;  %531 = vmatpush1.msra.mxu1 %v275_v49 }
  0xfb   :  { %455 = vmatprep.subr.mxu0 %v266_v51  ;;  %532 = vmatprep.subr.mxu1 %v268_v52 }
  0xfc   :  { %456 = vmatpush1.msra.mxu0 %v265_v53  ;;  %533 = vmatpush1.msra.mxu1 %v267_v54 }
  0xfd   :  { %457 = vmatprep.subr.mxu0 %v258_v55  ;;  %534 = vmatprep.subr.mxu1 %v260_v56 }
  0xfe   :  { %458 = vmatpush1.msra.mxu0 %v257_v57  ;;  %535 = vmatpush1.msra.mxu1 %v259_v58 }
  0xff   :  { %459 = vmatprep.subr.mxu0 %v250_v59  ;;  %536 = vmatprep.subr.mxu1 %v252_v60 }
 0x100   :  { %460 = vmatpush1.msra.mxu0 %v249_v61  ;;  %537 = vmatpush1.msra.mxu1 %v251_v62 }
 0x101   :  { %461 = vmatprep.subr.mxu0 %v242_v63  ;;  %538 = vmatprep.subr.mxu1 %v244_v1 }
 0x102   :  { %353 = vmatprep.mubr.f32.mxu0 %v770_v0  ;;  %430 = vmatprep.mubr.f32.mxu1 %v770_v0 }
 0x103   :  { %462 = vmatpush1.msra.mxu0 %v241_v2  ;;  %539 = vmatpush1.msra.mxu1 %v243_v3 }
 0x104   :  { %628 = vmatmul.mubr.msk.f32.gmra.mxu0 %vm133_vm2, %v212_v4  ;;  %630 = vmatmul.mubr.msk.f32.gmra.mxu1 %vm133_vm2, %v212_v4 }
 0x105   :  { %463 = vmatprep.subr.mxu0 %v234_v5  ;;  %540 = vmatprep.subr.mxu1 %v236_v6 }
 0x106   :  { %464 = vmatpush1.msra.mxu0 %v233_v7  ;;  %541 = vmatpush1.msra.mxu1 %v235_v8 }
 0x107   :  { %465 = vmatprep.subr.mxu0 %v226_v9  ;;  %542 = vmatprep.subr.mxu1 %v228_v10 }
 0x108   :  { %466 = vmatpush1.msra.mxu0 %v225_v11  ;;  %543 = vmatpush1.msra.mxu1 %v227_v12 }
 0x109   :  { %467 = vmatprep.subr.mxu0 %v218_v13  ;;  %544 = vmatprep.subr.mxu1 %v220_v14 }
 0x10a   :  { %468 = vmatpush1.msra.mxu0 %v217_v15  ;;  %501 = vmatprep.mubr.f32.mxu0 %v770_v0 }
 0x10b   :  { %545 = vmatpush1.msra.mxu1 %v219_v16  ;;  %578 = vmatprep.mubr.f32.mxu1 %v770_v0 }
 0x10c   :  { %631 = vmatmul.mubr.msk.f32.vlgmr.msra.gmra.mxu0 %vm133_vm2, %v819_v50  ;;  %633 = vmatmul.mubr.msk.f32.vlgmr.msra.gmra.mxu1 %vm133_vm2, %v819_v50 }
 0x10d   :  { %507 = vmatprep.mubr.f32.mxu0 %v770_v0  ;;  %584 = vmatprep.mubr.f32.mxu1 %v770_v0 }
 0x110   :  { %632 = vmatmul.mubr.msk.f32.gmra.mxu0 %vm133_vm2, %v212_v4  ;;  %634 = vmatmul.mubr.msk.f32.gmra.mxu1 %vm133_vm2, %v212_v4 }
 0x1b9   :  { %v349_v17 = vpop.f32.mrf.mxu0  ;;  %v426_v18 = vpop.f32.mrf.mxu1 }
 0x1ba   :  { %591 = vst [vmem:[#allocation9] sm:$0xff] %v349_v17  ;;  %593 = vst [vmem:[#allocation9 + $0x10] sm:$0xff] %v426_v18 }
 0x1bb   :  { %v351_v19 = vpop.f32.mrf.mxu0  ;;  %v428_v20 = vpop.f32.mrf.mxu1 }
 0x1bc   :  { %592 = vst [vmem:[#allocation9 + $0x8] sm:$0xff] %v351_v19  ;;  %594 = vst [vmem:[#allocation9 + $0x18] sm:$0xff] %v428_v20 }
 0x1c4   :  { %v355_v21 = vpop.f32.mrf.mxu0  ;;  %v432_v22 = vpop.f32.mrf.mxu1 }
 0x1c5   :  { %599 = vst [vmem:[#allocation9 + $0x40] sm:$0xff] %v355_v21  ;;  %601 = vst [vmem:[#allocation9 + $0x50] sm:$0xff] %v432_v22 }
 0x1c6   :  { %v357_v23 = vpop.f32.mrf.mxu0  ;;  %v434_v24 = vpop.f32.mrf.mxu1 }
 0x1c7   :  { %600 = vst [vmem:[#allocation9 + $0x48] sm:$0xff] %v357_v23  ;;  %602 = vst [vmem:[#allocation9 + $0x58] sm:$0xff] %v434_v24 }
 0x1cc   :  { %v503_v0 = vpop.f32.mrf.mxu0  ;;  %v580_v25 = vpop.f32.mrf.mxu1 }
 0x1cd   :  { %595 = vst [vmem:[#allocation9 + $0x20] sm:$0xff] %v503_v0  ;;  %597 = vst [vmem:[#allocation9 + $0x30] sm:$0xff] %v580_v25 }
 0x1ce   :  { %v505_v26 = vpop.f32.mrf.mxu0  ;;  %v582_v27 = vpop.f32.mrf.mxu1 }
 0x1cf   :  { %596 = vst [vmem:[#allocation9 + $0x28] sm:$0xff] %v505_v26  ;;  %598 = vst [vmem:[#allocation9 + $0x38] sm:$0xff] %v582_v27 }
 0x1d0   :  { %v509_v28 = vpop.f32.mrf.mxu0  ;;  %v586_v29 = vpop.f32.mrf.mxu1 }
 0x1d1   :  { %603 = vst [vmem:[#allocation9 + $0x60] sm:$0xff] %v509_v28  ;;  %605 = vst [vmem:[#allocation9 + $0x70] sm:$0xff] %v586_v29 }
 0x1d2   :  { %v511_v30 = vpop.f32.mrf.mxu0  ;;  %v588_v31 = vpop.f32.mrf.mxu1 }
 0x1d3   :  { %604 = vst [vmem:[#allocation9 + $0x68] sm:$0xff] %v511_v30  ;;  %606 = vst [vmem:[#allocation9 + $0x78] sm:$0xff] %v588_v31 }
 0x1d4   :  { %748 = shalt.err (!%p745_p5)
}
 0x1d5   :  { %618 = dma.vmem_to_hbm [thread:$0]  %s613_s2, 2048, %s848_s3, [#allocation5], %s768_s1, %s768_s1, %s769_s27  }
 0x1d6   :  { %761 = dma.done.wait [#allocation5], 2048  }
 0x1d7   :  { %762 = vsyncadd [#allocation5], 4294965248 }
 0x1d8   :  { %622 = vsyncpa [#allocation4], 1 }
 0x1d9   :  { %623 = vsyncpa [#allocation7], 1 }
 0x1da   :  { %624 = vsyncpa [#allocation5], 1 }

</bundles_post_ra>
